<compile_context>
chip_gen: v7x
topology: tpu7x:2x2x1
jax: 0.10.0
libtpu: 0.0.40
codegen_flags: <defaults>
</compile_context>

<pallas_src>
import jax
import jax.numpy as jnp
from jax.experimental import pallas as pl
from jax.experimental.pallas import tpu as pltpu

_LANE = 128                 # vreg lane width
_SUBLANE_32BIT = 8          # sublanes per vreg for 32-bit dtypes
_FAST_PATH_BYTES = 1 << 20  # below this, XLA's fused add already wins


def _pos_embed_kernel(x_ref, pos_ref, o_ref):
    # x_ref:   (bb, bl) tile of the flattened (B, S*D) input
    # pos_ref: (1,  bl) tile of the flattened (1, S*D) positional embedding
    #          (VPU broadcasts it over the sublane/batch axis)
    o_ref[...] = x_ref[...] + pos_ref[...]


def _chip_config():
    """Return (target_tile_bytes, vmem_cap_bytes) for the local TPU generation."""
    kind = ""
    try:
        kind = jax.devices()[0].device_kind.lower()
    except Exception:
        pass
    if "v7" in kind:
        target, default_vmem = 8 << 20, 64 << 20     # fast HBM, small VMEM
    elif "v6" in kind:
        target, default_vmem = 4 << 20, 128 << 20
    else:                                            # v5e / v5p / unknown
        target, default_vmem = 2 << 20, 128 << 20
    try:
        vmem = int(pltpu.get_tpu_info().vmem_capacity_bytes)
    except Exception:
        vmem = default_vmem
    return target, (3 * vmem) // 4                   # headroom for Mosaic internals


def _sublane_multiple(dtype) -> int:
    bits = jnp.dtype(dtype).itemsize * 8
    return _SUBLANE_32BIT * max(1, 32 // bits)       # 8 f32, 16 bf16, 32 int8/fp8


def _pick_blocks(B, L, itemsize, target_bytes, sub):
    """Pick (bb, bl) = (batch rows, flattened seq*dim lanes) per tile.

    Last-two block dims must be multiples of (sub, 128) or span the full dim.
    Size by area: lanes first, then grow the batch rows to the byte target.
    """
    lane_ok = (L % _LANE == 0)
    batch_ok = (B % sub == 0)

    if lane_ok:
        # One sublane group of lanes must not exceed the target by itself.
        max_bl = (target_bytes // (sub * itemsize)) // _LANE * _LANE
        bl = int(min(L, max(_LANE, max_bl)))
    else:
        # Full-dim exception to the 128 rule (ragged last dim -> masked stores;
        # pad upstream if this shape matters for performance).
        bl = L

    if batch_ok:
        rows = target_bytes // max(1, bl * itemsize)
        bb = int(min(B, max(sub, (rows // sub) * sub)))
    else:
        bb = B                                       # full-dim exception
        if lane_ok:
            # Enforce the byte budget by shrinking the lane block instead.
            max_bl = (target_bytes // max(1, bb * itemsize)) // _LANE * _LANE
            bl = int(min(L, max(_LANE, max_bl)))

    # Prefer >=2 batch blocks so v7x megacore keeps both TensorCores busy
    # (each core then holds its own VMEM-resident pos slice).
    if bb == B and bl == L and batch_ok and B >= 2 * sub:
        bb = max(sub, ((B // 2) // sub) * sub)

    return bb, bl


def positional_embedding_1d(x: jax.Array, pos_embedding: jax.Array,
                            *, donate_x: bool = False,
                            force_kernel: bool = False) -> jax.Array:
    """x: (B, S, D); pos_embedding: (1, S, D). Returns x + pos_embedding."""
    B, S, D = x.shape
    assert pos_embedding.shape == (1, S, D), pos_embedding.shape

    # NumPy/PyTorch-style promotion (never silently downcast the parameter).
    out_dtype = jnp.promote_types(x.dtype, pos_embedding.dtype)
    L = S * D
    itemsize = jnp.dtype(out_dtype).itemsize
    total_bytes = B * L * itemsize

    # Tiny-input fast path: kernel fixed costs dwarf the work.
    if total_bytes < _FAST_PATH_BYTES and not force_kernel:
        return (x.astype(out_dtype) + pos_embedding.astype(out_dtype))

    target_bytes, vmem_cap = _chip_config()
    sub = _sublane_multiple(out_dtype)
    bb, bl = _pick_blocks(B, L, itemsize, target_bytes, sub)

    # Explicit VMEM budget: double-buffered x, out and pos tiles.
    est = (2 * bb * bl + 2 * bb * bl + 2 * bl) * itemsize
    if est > vmem_cap:
        # Ragged shape we cannot tile under the VMEM budget -> plain XLA add.
        return (x.astype(out_dtype) + pos_embedding.astype(out_dtype))
    vmem_limit = int(min(vmem_cap, max(16 << 20, 2 * est)))

    # Lane-dense 2D view.
    x2 = x.reshape(B, L).astype(out_dtype)
    p2 = pos_embedding.reshape(1, L).astype(out_dtype)

    n_b = pl.cdiv(B, bb)
    n_l = pl.cdiv(L, bl)

    # Lane blocks outermost, batch blocks innermost: pos's block index depends
    # only on the lane block, so it is DMA'd once per lane block and stays
    # VMEM-resident across the whole inner batch loop.
    grid = (n_l, n_b)

    out2 = pl.pallas_call(
        _pos_embed_kernel,
        out_shape=jax.ShapeDtypeStruct((B, L), out_dtype),
        grid_spec=pltpu.PrefetchScalarGridSpec(
            num_scalar_prefetch=0,
            grid=grid,
            in_specs=[
                pl.BlockSpec((bb, bl), lambda j, i: (i, j)),   # x tile
                pl.BlockSpec((1, bl), lambda j, i: (0, j)),    # pos (broadcast)
            ],
            out_specs=pl.BlockSpec((bb, bl), lambda j, i: (i, j)),
        ),
        compiler_params=pltpu.CompilerParams(
            # Pure elementwise: every tile independent -> both axes parallel
            # (lets v7x shard tiles across its 2 TensorCores).
            dimension_semantics=("parallel", "parallel"),
            vmem_limit_bytes=vmem_limit,
        ),
        # Only alias when the caller actually donates x (e.g. jit with
        # donate_argnums=(0,)); otherwise XLA inserts a defensive full copy.
        input_output_aliases=({0: 0} if donate_x else {}),
    )(x2, p2)

    return out2.reshape(B, S, D)


if __name__ == "__main__":
    # Module config from the PyTorch spec: (batch_size, seq_len, emb_dim).
    batch, seq_len, dim = 2, 8, 32

    key = jax.random.PRNGKey(0)
    kx, kp = jax.random.split(key)

    x = jax.random.normal(kx, (batch, seq_len, dim), dtype=jnp.float32)
    # nn.Parameter(torch.zeros(1, seq_len, dim)) is zero-initialized in the
    # module; use a deterministic non-zero value so the add is exercised.
    pos_embedding = 0.01 * jax.random.normal(kp, (1, seq_len, dim),
                                             dtype=jnp.float32)

    # 1) Force the Pallas path on the module's (tiny) shape.
    out = positional_embedding_1d(x, pos_embedding, force_kernel=True)
    out = jax.block_until_ready(out)
    ref = x + pos_embedding
    assert out.shape == (batch, seq_len, dim)
    assert jnp.allclose(out, ref, atol=1e-6), "mismatch vs reference (tiny)"

    # 2) Lane/sublane-aligned shape exercising the multi-block tiled path.
    b2, s2, d2 = 16, 16, 64                     # L = 1024, B = 16
    x_big = jax.random.normal(kx, (b2, s2, d2), dtype=jnp.float32)
    p_big = 0.01 * jax.random.normal(kp, (1, s2, d2), dtype=jnp.float32)
    out_big = jax.block_until_ready(
        positional_embedding_1d(x_big, p_big, force_kernel=True))
    assert jnp.allclose(out_big, x_big + p_big, atol=1e-6), "mismatch (tiled)"

    # 3) Default call (tiny input -> jnp fast path).
    out_fast = jax.block_until_ready(positional_embedding_1d(x, pos_embedding))
    assert jnp.allclose(out_fast, ref, atol=1e-6), "mismatch (fast path)"

    print("KERNEL_OK")
</pallas_src>

<mosaic_0001>
module attributes {stable_mosaic.version = 11 : i64} {
  func.func @_pos_embed_kernel(%arg0: i32, %arg1: i32, %arg2: memref<2x256xf32, #tpu.memory_space<vmem>>, %arg3: memref<1x256xf32, #tpu.memory_space<vmem>>, %arg4: memref<2x256xf32, #tpu.memory_space<vmem>>) attributes {dimension_semantics = [#tpu.dimension_semantics<parallel>, #tpu.dimension_semantics<parallel>], iteration_bounds = array<i64: 1, 1>, scalar_prefetch = 0 : i64, scratch_operands = 0 : i64, tpu.core_type = #tpu.core_type<tc>, window_params = [{transform_indices = @transform_0, window_bounds = array<i64: 2, 256>}, {transform_indices = @transform_1, window_bounds = array<i64: 1, 256>}, {transform_indices = @transform_2, window_bounds = array<i64: 2, 256>}]} {
    %c0 = arith.constant 0 : index
    %c0_0 = arith.constant 0 : index
    %0 = vector.load %arg2[%c0, %c0_0] : memref<2x256xf32, #tpu.memory_space<vmem>>, vector<2x256xf32>
    %c0_1 = arith.constant 0 : index
    %c0_2 = arith.constant 0 : index
    %1 = vector.load %arg3[%c0_1, %c0_2] : memref<1x256xf32, #tpu.memory_space<vmem>>, vector<1x256xf32>
    %2 = vector.broadcast %1 : vector<1x256xf32> to vector<2x256xf32>
    %3 = arith.addf %0, %2 : vector<2x256xf32>
    %c0_3 = arith.constant 0 : index
    %c0_4 = arith.constant 0 : index
    %4 = vector.load %arg4[%c0_3, %c0_4] : memref<2x256xf32, #tpu.memory_space<vmem>>, vector<2x256xf32>
    tpu.vector_store %arg4[%c0_3, %c0_4], %3 {strides = array<i32>} : memref<2x256xf32, #tpu.memory_space<vmem>>, vector<2x256xf32>,
    return
  }
  func.func @transform_0(%arg0: i32, %arg1: i32) -> (i32, i32) {
    %c0_i32 = arith.constant 0 : i32
    return %arg1, %arg0 : i32, i32
  }
  func.func @transform_1(%arg0: i32, %arg1: i32) -> (i32, i32) {
    %c0_i32 = arith.constant 0 : i32
    %c0_i32_0 = arith.constant 0 : i32
    return %c0_i32, %arg0 : i32, i32
  }
  func.func @transform_2(%arg0: i32, %arg1: i32) -> (i32, i32) {
    %c0_i32 = arith.constant 0 : i32
    return %arg1, %arg0 : i32, i32
  }
}

</mosaic_0001>

<bundles_post_ra>
// kernel: tpu_custom_call.1
= control target key start
LH: loop header
LB: loop body
LE: loop exit
PB: predicated region body
PF: predicated region fallthrough
CT: control target
= control target key end

     0   :  { %7 = vsyncpa [#allocation3], 0  ;;  %s157_s0 = inlined_call_operand.hbm [shape: f32[2,256], index: 0, kind: input, shape index: {}]   ;;  %s158_s1 = inlined_call_operand.vmem [shape: f32[1,256], index: 1, kind: input, shape index: {}]   ;;  %s159_s2 = inlined_call_operand.hbm [shape: f32[2,256], index: 2, kind: output, shape index: {}]  }
   0x1   :  { %8 = vsyncpa [#allocation4], 0  ;;  %s112_s9 = smov [#allocation2]   ;;  %s64_s13 = scalar_lea.hbm %s157_s0, 64 }
   0x2   :  { %s15_s10 = sshll.u32 %s112_s9, 4  ;;  %p65_p0 = scmp.ne.s32.totalorder %s157_s0, %s64_s13  ;;  %s16_s10 = int_to_ptr.vmem [resolvable:$true] %s15_s10 }
   0x3   :  { %p68_p1 = scmp.lt.u32.totalorder %s64_s13, %s157_s0 }
   0x5   :  { %p70_p2 = pnand %p68_p1, %p65_p0 }
   0x7   :  { %73 = shalt.err (!%p70_p2)
}
   0x8   :  { %s74_s18 = scalar_lea.vmem %s16_s10, 64  ;;  %p79_p4 = scmp.lt.s32.totalorder %s16_s10, %s16_s10 }
   0x9   :  { %p75_p3 = scmp.ne.s32.totalorder %s16_s10, %s74_s18  ;;  %p80_p5 = scmp.lt.s32.totalorder %s74_s18, %s74_s18 }
   0xb   :  { %p81_p6 = por %p80_p5, %p79_p4 }
   0xd   :  { %p82_p7 = pnand %p81_p6, %p75_p3 }
   0xf   :  { %85 = shalt.err (!%p82_p7)
}
  0x10   :  { %18 = dma.hbm_to_vmem [thread:$0]  %s157_s0, 64, %s16_s10, [#allocation3]  }
  0x11   :  { %108 = dma.done.wait [#allocation3], 64  }
  0x12   :  { %109 = vsyncadd [#allocation3], 4294967232  ;;  %v27_v0 = vlaneseq  ;;  %v113_v1 = vmov 1983009808   ;;  %v25_v7 = vld [vmem:[%s158_s1] sm:$0x3] }
  0x13   :  { %v37_v2 = vunpack.c.l.s4 %v113_v1  ;;  %v24_v12 = vld [vmem:[#allocation2] sm:$0xf]  ;;  %s114_s23 = smov [#allocation5]  }
  0x14   :  { %v28_v3 = vshrl.u32 %v27_v0, 7  ;;  %s52_s0 = sshll.u32 %s114_s23, 4  ;;  %s53_s0 = int_to_ptr.vmem [resolvable:$true] %s52_s0 }
  0x15   :  { %v38_v6 = vunpack.c.0.s8 %v37_v2  ;;  %s86_s24 = scalar_lea.vmem %s53_s0, 64  ;;  %p91_p9 = scmp.lt.s32.totalorder %s53_s0, %s53_s0 }
  0x16   :  { %v29_v4 = vsub.s32 0, %v28_v3  ;;  %v33_v5 = vsub.s32 1, %v28_v3  ;;  %p87_p8 = scmp.ne.s32.totalorder %s53_s0, %s86_s24  ;;  %p92_p10 = scmp.lt.s32.totalorder %s86_s24, %s86_s24 }
  0x17   :  { %v41_v10 = vsub.s32 %v38_v6, %v28_v3 }
  0x18   :  { %v30_v8 = vrot.slane %v25_v7, %v29_v4  ;;  %v34_v9 = vrot.slane %v25_v7, %v33_v5  ;;  %p93_p11 = por %p92_p10, %p91_p9 }
  0x1a   :  { %v35_v11 = vcombine.low %v30_v8, %v34_v9  ;;  %p94_p12 = pnand %p93_p11, %p87_p8 }
  0x1c   :  { %v42_v13 = vrot.slane %v35_v11, %v41_v10 }
  0x1e   :  { %v44_v14 = vadd.f32 %v42_v13, %v24_v12 }
  0x20   :  { %45 = vst [vmem:[#allocation5] sm:$0xf] %v44_v14 }
  0x21   :  { %97 = shalt.err (!%p94_p12)
}
  0x22   :  { %s98_s26 = scalar_lea.hbm %s159_s2, 64 }
  0x23   :  { %p99_p13 = scmp.ne.s32.totalorder %s159_s2, %s98_s26  ;;  %p102_p0 = scmp.lt.u32.totalorder %s98_s26, %s159_s2 }
  0x25   :  { %p104_p1 = pnand %p102_p0, %p99_p13 }
  0x27   :  { %107 = shalt.err (!%p104_p1)
}
  0x28   :  { %55 = dma.vmem_to_hbm [thread:$0]  %s53_s0, 64, %s159_s2, [#allocation4]  }
  0x29   :  { %110 = dma.done.wait [#allocation4], 64  }
  0x2a   :  { %111 = vsyncadd [#allocation4], 4294967232 }
  0x2b   :  { %59 = vsyncpa [#allocation3], 1 }
  0x2c   :  { %60 = vsyncpa [#allocation4], 1 }

</bundles_post_ra>
